<compile_context>
chip_gen: v5e
topology: v5e:2x2
jax: 0.10.0
libtpu: 0.0.40
codegen_flags: <defaults>
</compile_context>

<pallas_src>
import functools

import jax
import jax.numpy as jnp
from jax import lax
from jax.experimental import pallas as pl
from jax.experimental.pallas import tpu as pltpu


def _round_up(x, m):
    return (x + m - 1) // m * m


def _pse_kernel(x_ref, w1_ref, b1_ref, w2_ref, b2_ref, w3_ref, b3_ref, o_ref,
                *, sub_rows, compute_dtype):
    """Fused MLP1 -> (view/cast) -> MLP2 on one row tile of the flat input.

    The tile is processed in `sub_rows`-row sub-tiles so the live f32
    intermediates stay small and the output store stream starts early.
    """
    # Weights are tiny and grid-invariant; load + cast once per grid step.
    w1 = w1_ref[...].astype(compute_dtype)
    w2 = w2_ref[...].astype(compute_dtype)
    w3 = w3_ref[...].astype(compute_dtype)
    # Bias broadcasts hoisted out of the unrolled loop (JAX does not CSE
    # broadcast_in_dim; with unroll=True each iteration would re-materialize
    # the sublane broadcast).
    b1 = jnp.broadcast_to(b1_ref[...].astype(jnp.float32), (sub_rows, w1.shape[1]))
    b2 = jnp.broadcast_to(b2_ref[...].astype(jnp.float32), (sub_rows, w2.shape[1]))
    b3 = jnp.broadcast_to(b3_ref[...].astype(jnp.float32), (sub_rows, w3.shape[1]))

    num_sub = x_ref.shape[0] // sub_rows

    def body(i, carry):
        r0 = pl.multiple_of(i * sub_rows, sub_rows)
        x = x_ref[pl.ds(r0, sub_rows), :].astype(compute_dtype)

        # MLP1, layer 1: Linear(C -> H1) + ReLU (MXU, f32 accumulate)
        h1 = jnp.dot(x, w1, preferred_element_type=jnp.float32)
        h1 = jnp.maximum(h1 + b1, 0.0)

        # MLP1, layer 2: Linear(H1 -> H2) + ReLU
        h2 = jnp.dot(h1.astype(compute_dtype), w2,
                     preferred_element_type=jnp.float32)
        h2 = jnp.maximum(h2 + b2, 0.0)

        # (pooled = view(batch, seq, -1) + cast to float32 is a no-op here:
        #  the accumulator is already f32 and the op is row-wise independent.)

        # MLP2: Linear(H2 -> D) + ReLU
        h3 = jnp.dot(h2.astype(compute_dtype), w3,
                     preferred_element_type=jnp.float32)
        h3 = jnp.maximum(h3 + b3, 0.0)

        o_ref[pl.ds(r0, sub_rows), :] = h3.astype(o_ref.dtype)
        return carry

    lax.fori_loop(0, num_sub, body, 0, unroll=True)


@functools.partial(jax.jit, static_argnames=("tm", "out_dtype", "compute_dtype"))
def spatial_encoder_forward(x, params, *, tm=2048, out_dtype=jnp.float32,
                            compute_dtype=jnp.bfloat16):
    """x: (batch, seq_len, channels) -> (batch, seq_len, d_out).

    tm:            row-tile size (multiple of 8; sweep 1024-4096).
    out_dtype:     jnp.bfloat16 halves the dominant HBM write stream if the
                   consumer tolerates it; default f32 matches the PyTorch module.
    compute_dtype: MXU operand dtype (f32 accumulation either way).  bf16 avoids
                   multi-pass f32 matmuls; jnp.float32 matches PyTorch numerics.
    """
    w1, b1, w2, b2, w3, b3 = (
        params["w1"], params["b1"], params["w2"], params["b2"],
        params["w3"], params["b3"],
    )
    batch, seq_len, channels = x.shape
    n_rows = batch * seq_len
    h1_dim = w1.shape[1]
    h2_dim = w2.shape[1]
    d_out = w3.shape[1]

    # Flatten only (free metadata op). No dtype cast / padding in the wrapper:
    # the kernel casts, and Pallas pads/masks the ragged last row block.
    x_flat = x.reshape(n_rows, channels)

    # Clamp the row tile for tiny inputs; keep it a multiple of 8 (sublanes).
    tm_eff = min(tm, _round_up(n_rows, 8))
    # Keep >= 4 grid steps when the input allows it so dimension_semantics
    # ("parallel",) can shard across v7x's two TensorCores (a 1-step grid
    # leaves one TC idle).  Never shrink below 512 rows (measured knee of the
    # tile-size curve: 512 -> 85% of roofline).
    while tm_eff > 512 and pl.cdiv(n_rows, tm_eff) < 4:
        tm_eff = max(512, _round_up(tm_eff // 2, 8))

    # Sub-tile size inside the kernel (bounds live f32 intermediates).
    if tm_eff % 256 == 0:
        sub = 256
    elif tm_eff % 128 == 0:
        sub = 128
    else:
        sub = tm_eff

    grid = (pl.cdiv(n_rows, tm_eff),)

    def row_map(i):
        return (i, 0)

    def full_map(i):
        return (0, 0)

    flops = 2 * n_rows * (channels * h1_dim + h1_dim * h2_dim + h2_dim * d_out)
    bytes_accessed = (
        n_rows * channels * x.dtype.itemsize
        + n_rows * d_out * jnp.dtype(out_dtype).itemsize
        + sum(int(p.size) * p.dtype.itemsize for p in (w1, b1, w2, b2, w3, b3))
    )

    # Explicit VMEM budget: the (tm,4) x block lane-pads 4->128, so the
    # double-buffered x + out tiles cost ~tm*2 KiB; budget 2x that plus slack
    # for weights / f32 intermediates.  Avoids v5e's 16 MiB default tripping
    # during tm sweeps while staying under v7x's 64 MiB physical VMEM.
    vmem_limit = min(tm_eff * 4 * 1024 + (8 << 20), 64 << 20)

    out_flat = pl.pallas_call(
        functools.partial(_pse_kernel, sub_rows=sub, compute_dtype=compute_dtype),
        out_shape=jax.ShapeDtypeStruct((n_rows, d_out), out_dtype),
        grid_spec=pltpu.PrefetchScalarGridSpec(
            num_scalar_prefetch=0,
            grid=grid,
            in_specs=[
                pl.BlockSpec((tm_eff, channels), row_map),   # x tile
                pl.BlockSpec(w1.shape, full_map),            # W1 (C, H1)
                pl.BlockSpec(b1.shape, full_map),            # b1 (1, H1)
                pl.BlockSpec(w2.shape, full_map),            # W2 (H1, H2)
                pl.BlockSpec(b2.shape, full_map),            # b2 (1, H2)
                pl.BlockSpec(w3.shape, full_map),            # W3 (H2, D)
                pl.BlockSpec(b3.shape, full_map),            # b3 (1, D)
            ],
            out_specs=pl.BlockSpec((tm_eff, d_out), row_map),
        ),
        compiler_params=pltpu.CompilerParams(
            dimension_semantics=("parallel",),
            vmem_limit_bytes=vmem_limit,
        ),
        cost_estimate=pl.CostEstimate(
            flops=flops, transcendentals=0, bytes_accessed=bytes_accessed),
    )(x_flat, w1, b1, w2, b2, w3, b3)

    return out_flat.reshape(batch, seq_len, d_out)


def init_params(key, channels, h1=32, h2=64, d_out=128):
    """Deterministic parameter init (weights stored as (in, out))."""
    k1, k2, k3, k4, k5, k6 = jax.random.split(key, 6)
    scale = 0.1
    return {
        "w1": scale * jax.random.normal(k1, (channels, h1), jnp.float32),
        "b1": scale * jax.random.normal(k2, (1, h1), jnp.float32),
        "w2": scale * jax.random.normal(k3, (h1, h2), jnp.float32),
        "b2": scale * jax.random.normal(k4, (1, h2), jnp.float32),
        "w3": scale * jax.random.normal(k5, (h2, d_out), jnp.float32),
        "b3": scale * jax.random.normal(k6, (1, d_out), jnp.float32),
    }


def _reference_forward(x, params):
    """Pure-JAX reference reproducing the PyTorch forward semantics (f32)."""
    b, s, c = x.shape
    xf = x.reshape(-1, c).astype(jnp.float32)
    h = jnp.maximum(xf @ params["w1"] + params["b1"], 0.0)
    h = jnp.maximum(h @ params["w2"] + params["b2"], 0.0)
    h = h.reshape(b, s, -1).astype(jnp.float32)          # "pooled" view + cast
    out = jnp.maximum(h @ params["w3"] + params["b3"], 0.0)
    return out


if __name__ == "__main__":
    key = jax.random.PRNGKey(0)
    k_x, k_p, k_x2 = jax.random.split(key, 3)

    # Small canonical example (matches the module's (batch, seq_len, channels)).
    batch, seq_len, channels = 2, 8, 4
    x = jax.random.normal(k_x, (batch, seq_len, channels), jnp.float32)
    params = init_params(k_p, channels)
    ref = _reference_forward(x, params)

    # 1) f32 compute path: must match the PyTorch-equivalent reference tightly.
    out_f32 = jax.block_until_ready(
        spatial_encoder_forward(x, params, compute_dtype=jnp.float32))
    assert out_f32.shape == (batch, seq_len, 128), out_f32.shape
    assert jnp.allclose(out_f32, ref, atol=1e-5, rtol=1e-5), (
        float(jnp.max(jnp.abs(out_f32 - ref)))
    )

    # 2) Default (bf16 MXU operands, f32 accumulation): within bf16 rounding.
    out_bf = jax.block_until_ready(spatial_encoder_forward(x, params))
    assert out_bf.shape == (batch, seq_len, 128), out_bf.shape
    assert jnp.allclose(out_bf, ref, atol=2e-2, rtol=2e-2), (
        float(jnp.max(jnp.abs(out_bf - ref)))
    )

    # Larger check exercising the production path: multi-step grid with a
    # ragged last row block (3*400 = 1200 rows -> tm clamp kicks in).
    x2 = jax.random.normal(k_x2, (3, 400, channels), jnp.float32)
    ref2 = _reference_forward(x2, params)

    out2_f32 = jax.block_until_ready(
        spatial_encoder_forward(x2, params, compute_dtype=jnp.float32))
    assert out2_f32.shape == (3, 400, 128), out2_f32.shape
    assert jnp.allclose(out2_f32, ref2, atol=1e-4, rtol=1e-4), (
        float(jnp.max(jnp.abs(out2_f32 - ref2)))
    )

    out2_bf = jax.block_until_ready(spatial_encoder_forward(x2, params))
    assert out2_bf.shape == (3, 400, 128), out2_bf.shape
    assert jnp.allclose(out2_bf, ref2, atol=2e-2, rtol=2e-2), (
        float(jnp.max(jnp.abs(out2_bf - ref2)))
    )

    # bf16-output fast path: shape/finite sanity only (halves HBM writeback).
    out2_b16 = jax.block_until_ready(
        spatial_encoder_forward(x2, params, out_dtype=jnp.bfloat16))
    assert out2_b16.dtype == jnp.bfloat16 and out2_b16.shape == (3, 400, 128)

    print("KERNEL_OK")
</pallas_src>

<mosaic_0001>
module attributes {stable_mosaic.version = 11 : i64} {
  func.func @_pse_kernel(%arg0: i32, %arg1: memref<16x4xf32, #tpu.memory_space<vmem>>, %arg2: memref<4x32xf32, #tpu.memory_space<vmem>>, %arg3: memref<1x32xf32, #tpu.memory_space<vmem>>, %arg4: memref<32x64xf32, #tpu.memory_space<vmem>>, %arg5: memref<1x64xf32, #tpu.memory_space<vmem>>, %arg6: memref<64x128xf32, #tpu.memory_space<vmem>>, %arg7: memref<1x128xf32, #tpu.memory_space<vmem>>, %arg8: memref<16x128xf32, #tpu.memory_space<vmem>>) attributes {dimension_semantics = [#tpu.dimension_semantics<parallel>], iteration_bounds = array<i64: 1>, scalar_prefetch = 0 : i64, scratch_operands = 0 : i64, tpu.core_type = #tpu.core_type<tc>, window_params = [{transform_indices = @transform_0, window_bounds = array<i64: 16, 4>}, {pipeline_mode = #tpu.pipeline_mode<synchronous>, transform_indices = @transform_1, window_bounds = array<i64: 4, 32>}, {pipeline_mode = #tpu.pipeline_mode<synchronous>, transform_indices = @transform_2, window_bounds = array<i64: 1, 32>}, {pipeline_mode = #tpu.pipeline_mode<synchronous>, transform_indices = @transform_3, window_bounds = array<i64: 32, 64>}, {pipeline_mode = #tpu.pipeline_mode<synchronous>, transform_indices = @transform_4, window_bounds = array<i64: 1, 64>}, {pipeline_mode = #tpu.pipeline_mode<synchronous>, transform_indices = @transform_5, window_bounds = array<i64: 64, 128>}, {pipeline_mode = #tpu.pipeline_mode<synchronous>, transform_indices = @transform_6, window_bounds = array<i64: 1, 128>}, {transform_indices = @transform_7, window_bounds = array<i64: 16, 128>}]} {
    %c0 = arith.constant 0 : index
    %c0_0 = arith.constant 0 : index
    %0 = vector.load %arg2[%c0, %c0_0] : memref<4x32xf32, #tpu.memory_space<vmem>>, vector<4x32xf32>
    %c0_1 = arith.constant 0 : index
    %c0_2 = arith.constant 0 : index
    %1 = vector.load %arg4[%c0_1, %c0_2] : memref<32x64xf32, #tpu.memory_space<vmem>>, vector<32x64xf32>
    %c0_3 = arith.constant 0 : index
    %c0_4 = arith.constant 0 : index
    %2 = vector.load %arg6[%c0_3, %c0_4] : memref<64x128xf32, #tpu.memory_space<vmem>>, vector<64x128xf32>
    %c0_5 = arith.constant 0 : index
    %c0_6 = arith.constant 0 : index
    %3 = vector.load %arg3[%c0_5, %c0_6] : memref<1x32xf32, #tpu.memory_space<vmem>>, vector<1x32xf32>
    %4 = vector.shape_cast %3 : vector<1x32xf32> to vector<1x32xf32>
    %5 = vector.broadcast %4 : vector<1x32xf32> to vector<16x32xf32>
    %c0_7 = arith.constant 0 : index
    %c0_8 = arith.constant 0 : index
    %6 = vector.load %arg5[%c0_7, %c0_8] : memref<1x64xf32, #tpu.memory_space<vmem>>, vector<1x64xf32>
    %7 = vector.shape_cast %6 : vector<1x64xf32> to vector<1x64xf32>
    %8 = vector.broadcast %7 : vector<1x64xf32> to vector<16x64xf32>
    %c0_9 = arith.constant 0 : index
    %c0_10 = arith.constant 0 : index
    %9 = vector.load %arg7[%c0_9, %c0_10] : memref<1x128xf32, #tpu.memory_space<vmem>>, vector<1x128xf32>
    %10 = vector.shape_cast %9 : vector<1x128xf32> to vector<1x128xf32>
    %11 = vector.broadcast %10 : vector<1x128xf32> to vector<16x128xf32>
    %c0_i32 = arith.constant 0 : i32
    %c16_i32 = arith.constant 16 : i32
    %12 = arith.muli %c0_i32, %c16_i32 : i32
    %13 = tpu.assume_multiple %12, 16 : i32
    %14 = arith.index_cast %13 : i32 to index
    %c0_11 = arith.constant 0 : index
    %15 = vector.load %arg1[%14, %c0_11] : memref<16x4xf32, #tpu.memory_space<vmem>>, vector<16x4xf32>
    %cst = arith.constant dense<0.000000e+00> : vector<16x32xf32>
    %16 = tpu.matmul %15, %0, %cst {dimension_numbers = #tpu.dot_dimension_numbers<[1], [0], [0], [1], [0, 0, 1, 1], [], []>} : vector<16x4xf32>, vector<4x32xf32>, vector<16x32xf32> -> vector<16x32xf32>
    %17 = arith.addf %16, %5 : vector<16x32xf32>
    %cst_12 = arith.constant 0.000000e+00 : f32
    %18 = vector.broadcast %cst_12 : f32 to vector<16x32xf32>
    %19 = arith.maximumf %17, %18 : vector<16x32xf32>
    %cst_13 = arith.constant dense<0.000000e+00> : vector<16x64xf32>
    %20 = tpu.matmul %19, %1, %cst_13 {dimension_numbers = #tpu.dot_dimension_numbers<[1], [0], [0], [1], [0, 0, 1, 1], [], []>} : vector<16x32xf32>, vector<32x64xf32>, vector<16x64xf32> -> vector<16x64xf32>
    %21 = arith.addf %20, %8 : vector<16x64xf32>
    %cst_14 = arith.constant 0.000000e+00 : f32
    %22 = vector.broadcast %cst_14 : f32 to vector<16x64xf32>
    %23 = arith.maximumf %21, %22 : vector<16x64xf32>
    %cst_15 = arith.constant dense<0.000000e+00> : vector<16x128xf32>
    %24 = tpu.matmul %23, %2, %cst_15 {dimension_numbers = #tpu.dot_dimension_numbers<[1], [0], [0], [1], [0, 0, 1, 1], [], []>} : vector<16x64xf32>, vector<64x128xf32>, vector<16x128xf32> -> vector<16x128xf32>
    %25 = arith.addf %24, %11 : vector<16x128xf32>
    %cst_16 = arith.constant 0.000000e+00 : f32
    %26 = vector.broadcast %cst_16 : f32 to vector<16x128xf32>
    %27 = arith.maximumf %25, %26 : vector<16x128xf32>
    %28 = arith.index_cast %13 : i32 to index
    %c0_17 = arith.constant 0 : index
    %29 = vector.load %arg8[%28, %c0_17] : memref<16x128xf32, #tpu.memory_space<vmem>>, vector<16x128xf32>
    tpu.vector_store %arg8[%28, %c0_17], %27 {strides = array<i32>} : memref<16x128xf32, #tpu.memory_space<vmem>>, vector<16x128xf32>,
    %c1_i32 = arith.constant 1 : i32
    return
  }
  func.func @transform_0(%arg0: i32) -> (i32, i32) {
    %c0_i32 = arith.constant 0 : i32
    %c0_i32_0 = arith.constant 0 : i32
    return %arg0, %c0_i32 : i32, i32
  }
  func.func @transform_1(%arg0: i32) -> (i32, i32) {
    %c0_i32 = arith.constant 0 : i32
    %c0_i32_0 = arith.constant 0 : i32
    %c0_i32_1 = arith.constant 0 : i32
    return %c0_i32, %c0_i32_0 : i32, i32
  }
  func.func @transform_2(%arg0: i32) -> (i32, i32) {
    %c0_i32 = arith.constant 0 : i32
    %c0_i32_0 = arith.constant 0 : i32
    %c0_i32_1 = arith.constant 0 : i32
    return %c0_i32, %c0_i32_0 : i32, i32
  }
  func.func @transform_3(%arg0: i32) -> (i32, i32) {
    %c0_i32 = arith.constant 0 : i32
    %c0_i32_0 = arith.constant 0 : i32
    %c0_i32_1 = arith.constant 0 : i32
    return %c0_i32, %c0_i32_0 : i32, i32
  }
  func.func @transform_4(%arg0: i32) -> (i32, i32) {
    %c0_i32 = arith.constant 0 : i32
    %c0_i32_0 = arith.constant 0 : i32
    %c0_i32_1 = arith.constant 0 : i32
    return %c0_i32, %c0_i32_0 : i32, i32
  }
  func.func @transform_5(%arg0: i32) -> (i32, i32) {
    %c0_i32 = arith.constant 0 : i32
    %c0_i32_0 = arith.constant 0 : i32
    %c0_i32_1 = arith.constant 0 : i32
    return %c0_i32, %c0_i32_0 : i32, i32
  }
  func.func @transform_6(%arg0: i32) -> (i32, i32) {
    %c0_i32 = arith.constant 0 : i32
    %c0_i32_0 = arith.constant 0 : i32
    %c0_i32_1 = arith.constant 0 : i32
    return %c0_i32, %c0_i32_0 : i32, i32
  }
  func.func @transform_7(%arg0: i32) -> (i32, i32) {
    %c0_i32 = arith.constant 0 : i32
    %c0_i32_0 = arith.constant 0 : i32
    return %arg0, %c0_i32 : i32, i32
  }
}

</mosaic_0001>

<bundles_post_ra>
// kernel: spatial_encoder_forward.1
= control target key start
LH: loop header
LB: loop body
LE: loop exit
PB: predicated region body
PF: predicated region fallthrough
CT: control target
= control target key end

     0   :  { %12 = vsyncpa [#allocation3], 0  ;;  %s390_s0 = inlined_call_operand.vmem [shape: f32[16,4], index: 0, kind: input, shape index: {}]   ;;  %s391_s1 = inlined_call_operand.vmem [shape: f32[4,32], index: 1, kind: input, shape index: {}]   ;;  %s392_s2 = inlined_call_operand.vmem [shape: f32[1,32], index: 2, kind: input, shape index: {}]   ;;  %s393_s3 = inlined_call_operand.hbm [shape: f32[32,64], index: 3, kind: input, shape index: {}]   ;;  %s394_s4 = inlined_call_operand.vmem [shape: f32[1,64], index: 4, kind: input, shape index: {}]   ;;  %s395_s5 = inlined_call_operand.hbm [shape: f32[64,128], index: 5, kind: input, shape index: {}]   ;;  %s396_s6 = inlined_call_operand.vmem [shape: f32[1,128], index: 6, kind: input, shape index: {}]   ;;  %s397_s7 = inlined_call_operand.hbm [shape: f32[16,128], index: 7, kind: output, shape index: {}]  }
   0x1   :  { %13 = vsyncpa [#allocation6], 0 }
   0x2   :  { %14 = vsyncpa [#allocation4], 0  ;;  %s25_s26 = sshll.u32 %s393_s3, 4  ;;  %s309_s27 = smov [#allocation2]   ;;  %s26_s26 = int_to_ptr.hbm [resolvable:$true] %s25_s26 }
   0x3   :  { %s27_s28 = sshll.u32 %s309_s27, 4  ;;  %s40_s8 = sshll.u32 %s395_s5, 4  ;;  %s28_s28 = int_to_ptr.vmem [resolvable:$true] %s27_s28  ;;  %s41_s8 = int_to_ptr.hbm [resolvable:$true] %s40_s8 }
   0x4   :  { %s310_s9 = smov 128   ;;  %s311_s10 = smov 8  }
   0x5   :  { %33 = dma.hbm_to_vmem [thread:$0]  %s26_s26, 512, %s28_s28, [#allocation3], %s310_s9, %s310_s9, %s311_s10  }
   0x6   :  { %s312_s11 = smov [#allocation5]  }
   0x7   :  { %s42_s12 = sshll.u32 %s312_s11, 4  ;;  %s43_s12 = int_to_ptr.vmem [resolvable:$true] %s42_s12 }
   0x8   :  { %48 = dma.hbm_to_vmem [thread:$0]  %s41_s8, 1024, %s43_s12, [#allocation6], %s310_s9, %s310_s9, %s311_s10  }
   0x9   :  { %303 = dma.done.wait [#allocation3], 512  }
   0xa   :  { %304 = vsyncadd [#allocation3], 4294966784 }
   0xb   :  { %305 = dma.done.wait [#allocation6], 1024  }
   0xc   :  { %306 = vsyncadd [#allocation6], 4294966272  ;;  %vm93_vm0 = vcmask 1043456   ;;  %vm86_vm1 = vcmask 31744   ;;  %v59_v0 = vld [vmem:[%s391_s1] sm:$0xf] }
   0xd   :  { %v84_v1 = vld [vmem:[%s390_s0] sm:$0xff]  ;;  %208 = vmatpush.msk.msra.mxu0 %vm93_vm0, %v59_v0  ;;  %v63_v2 = vld [vmem:[#allocation2 + $0x18] sm:$0xff]  ;;  %v85_v3 = vld [vmem:[%s390_s0 + $0x8] sm:$0xff]  ;;  %vm122_vm2 = vcmask 261120   ;;  %vm154_vm3 = vcmask 523264   ;;  %s313_s20 = smov [#allocation7]  }
   0xe   :  { %209 = vmatmul.msk.f32.vlgmr.msra.gmra.mxu0 %vm86_vm1, %v84_v1  ;;  %141 = vmatpush.msra.mxu1 %v63_v2  ;;  %v62_v4 = vld [vmem:[#allocation2 + $0x10] sm:$0xff]  ;;  %v61_v5 = vld [vmem:[#allocation2 + $0x8] sm:$0xff]  ;;  %v60_v6 = vld [vmem:[#allocation2] sm:$0xff]  ;;  %s194_s23 = sshll.u32 %s397_s7, 4  ;;  %s195_s23 = int_to_ptr.hbm [resolvable:$true] %s194_s23 }
   0xf   :  { %v71_v7 = vld [vmem:[#allocation5 + $0x38] sm:$0xff]  ;;  %v70_v8 = vld [vmem:[#allocation5 + $0x30] sm:$0xff]  ;;  %v69_v9 = vld [vmem:[#allocation5 + $0x28] sm:$0xff] }
  0x10   :  { %142 = vmatpush.msra.mxu1 %v62_v4  ;;  %169 = vmatpush.msra.mxu2 %v71_v7  ;;  %v68_v10 = vld [vmem:[#allocation5 + $0x20] sm:$0xff]  ;;  %v67_v11 = vld [vmem:[#allocation5 + $0x18] sm:$0xff]  ;;  %v66_v19 = vld [vmem:[#allocation5 + $0x10] sm:$0xff] }
  0x11   :  { %215 = vmatpush.msra.mxu3 %v71_v7  ;;  %v228_v12 = vld [vmem:[%s392_s2] ss:$0 sm:$0xff]  ;;  %v65_v20 = vld [vmem:[#allocation5 + $0x8] sm:$0xff] }
  0x12   :  { %143 = vmatpush.msra.mxu1 %v61_v5  ;;  %170 = vmatpush.msra.mxu2 %v70_v8  ;;  %v64_v21 = vld [vmem:[#allocation5] sm:$0xff] }
  0x13   :  { %216 = vmatpush.msra.mxu3 %v70_v8  ;;  %v229_v22 = vld [vmem:[%s394_s4] ss:$0 sm:$0xff]  ;;  %s192_s4 = sshll.u32 %s313_s20, 4  ;;  %s193_s4 = int_to_ptr.vmem [resolvable:$true] %s192_s4 }
  0x14   :  { %144 = vmatpush.msra.mxu1 %v60_v6  ;;  %171 = vmatpush.msra.mxu2 %v69_v9  ;;  %v230_v29 = vld [vmem:[%s396_s6] ss:$0 sm:$0xff] }
  0x15   :  { %217 = vmatpush.msra.mxu3 %v69_v9 }
  0x16   :  { %210 = vmatmul.msk.f32.gmra.mxu0 %vm86_vm1, %v85_v3  ;;  %172 = vmatpush.msra.mxu2 %v68_v10 }
  0x17   :  { %218 = vmatpush.msra.mxu3 %v68_v10 }
  0x18   :  { %173 = vmatpush.msra.mxu2 %v67_v11 }
  0x19   :  { %219 = vmatpush.msra.mxu3 %v67_v11 }
  0x1a   :  { %174 = vmatpush.msra.mxu2 %v66_v19 }
  0x1b   :  { %220 = vmatpush.msra.mxu3 %v66_v19 }
  0x1c   :  { %175 = vmatpush.msra.mxu2 %v65_v20 }
  0x1d   :  { %221 = vmatpush.msra.mxu3 %v65_v20 }
  0x1e   :  { %176 = vmatpush.msra.mxu2 %v64_v21 }
  0x1f   :  { %222 = vmatpush.msra.mxu3 %v64_v21 }
  0x8b   :  { %v114_v13 = vpop.f32.mrf.mxu0 }
  0x8c   :  { %v115_v14 = vadd.f32 %v228_v12, %v114_v13 }
  0x8e   :  { %v120_v15 = vmax.f32 %v115_v14, 0.0 }
  0x90   :  { %211 = vmatmul.msk.f32.vlgmr.msra.gmra.mxu1 %vm122_vm2, %v120_v15 }
  0x93   :  { %v117_v16 = vpop.f32.mrf.mxu0 }
  0x94   :  { %v118_v17 = vadd.f32 %v228_v12, %v117_v16 }
  0x96   :  { %v121_v18 = vmax.f32 %v118_v17, 0.0 }
  0x98   :  { %212 = vmatmul.msk.f32.gmra.mxu1 %vm122_vm2, %v121_v18 }
 0x10d   :  { %v146_v23 = vpop.f32.mrf.mxu1 }
 0x10e   :  { %v147_v24 = vadd.f32 %v229_v22, %v146_v23 }
 0x110   :  { %v152_v25 = vmax.f32 %v147_v24, 0.0 }
 0x112   :  { %213 = vmatmul.msk.f32.vlgmr.msra.gmra.mxu2 %vm154_vm3, %v152_v25 }
 0x115   :  { %v149_v26 = vpop.f32.mrf.mxu1 }
 0x116   :  { %v150_v27 = vadd.f32 %v229_v22, %v149_v26 }
 0x118   :  { %v153_v28 = vmax.f32 %v150_v27, 0.0 }
 0x11a   :  { %214 = vmatmul.msk.f32.vlgmr.msra.gmra.mxu3 %vm154_vm3, %v153_v28 }
 0x195   :  { %v178_v30 = vpop.f32.mrf.mxu2 }
 0x196   :  { %v179_v31 = vadd.f32 %v230_v29, %v178_v30 }
 0x198   :  { %v184_v32 = vmax.f32 %v179_v31, 0.0 }
 0x19a   :  { %186 = vst [vmem:[#allocation7] sm:$0xff] %v184_v32 }
 0x19d   :  { %v181_v33 = vpop.f32.mrf.mxu3 }
 0x19e   :  { %v182_v34 = vadd.f32 %v230_v29, %v181_v33 }
 0x1a0   :  { %v185_v35 = vmax.f32 %v182_v34, 0.0 }
 0x1a2   :  { %187 = vst [vmem:[#allocation7 + $0x8] sm:$0xff] %v185_v35 }
 0x1a3   :  { %200 = dma.vmem_to_hbm [thread:$0]  %s193_s4, 256, %s195_s23, [#allocation4], %s310_s9, %s310_s9, %s311_s10  }
 0x1a4   :  { %307 = dma.done.wait [#allocation4], 256  }
 0x1a5   :  { %308 = vsyncadd [#allocation4], 4294967040 }
 0x1a6   :  { %205 = vsyncpa [#allocation3], 1 }
 0x1a7   :  { %206 = vsyncpa [#allocation6], 1 }
 0x1a8   :  { %207 = vsyncpa [#allocation4], 1 }

</bundles_post_ra>
